<compile_context>
chip_gen: v7x
topology: tpu7x:2x2x1
jax: 0.10.0
libtpu: 0.0.40
codegen_flags: <defaults>
</compile_context>

<pallas_src>
import functools

import jax
import jax.numpy as jnp
from jax.experimental import pallas as pl
from jax.experimental.pallas import tpu as pltpu

HIDDEN = 64
LANE = 128  # TPU lane width; hidden/output weight tiles are padded to this.
SUBLANE = 8


def _round_up(n, m):
    return ((n + m - 1) // m) * m


def qnetwork_kernel(out_w, x_ref, w1_ref, w2_ref, w3_ref, w4_ref, b_ref, o_ref):
    # x arrives f32 at its (sublane-padded) logical width; cast to bf16 here.
    x = x_ref[...].astype(jnp.bfloat16)

    # Layer 1: K = padded state_size (small K matmul is fine; compute is trivial).
    h = jnp.dot(x, w1_ref[...], preferred_element_type=jnp.float32) + b_ref[0:1, :]
    h = jnp.maximum(h, 0.0)

    h = jnp.dot(h.astype(jnp.bfloat16), w2_ref[...],
                preferred_element_type=jnp.float32) + b_ref[1:2, :]
    h = jnp.maximum(h, 0.0)

    h = jnp.dot(h.astype(jnp.bfloat16), w3_ref[...],
                preferred_element_type=jnp.float32) + b_ref[2:3, :]
    h = jnp.maximum(h, 0.0)

    # Full 128-lane dot, then slice the logical action columns in-register
    # right before the (narrow) HBM store -- no padded output round-trip.
    out = jnp.dot(h.astype(jnp.bfloat16), w4_ref[...],
                  preferred_element_type=jnp.float32) + b_ref[3:4, :]
    o_ref[...] = out[:, :out_w]


def init_params(key, state_size, action_size):
    """Logical-shape f32 params mimicking PyTorch Linear default init."""
    dims = [(state_size, HIDDEN), (HIDDEN, HIDDEN),
            (HIDDEN, HIDDEN), (HIDDEN, action_size)]
    params = {}
    keys = jax.random.split(key, 2 * len(dims))
    for i, (fan_in, fan_out) in enumerate(dims):
        bound = 1.0 / jnp.sqrt(jnp.float32(fan_in))
        params[f"w{i+1}"] = jax.random.uniform(
            keys[2 * i], (fan_in, fan_out), jnp.float32, -bound, bound)
        params[f"b{i+1}"] = jax.random.uniform(
            keys[2 * i + 1], (1, fan_out), jnp.float32, -bound, bound)
    return params


def prepare_params(params):
    """One-time prep: bf16 weights (hidden padded to 128 lanes, state padded
    only to 8 sublanes) and all biases packed into a single (8, 128) f32 array.
    """
    state_size = params["w1"].shape[0]
    action_size = params["w4"].shape[1]
    s_pad = _round_up(state_size, SUBLANE)

    def pad_w(w, rows, cols):
        w = jnp.pad(w, ((0, rows - w.shape[0]), (0, cols - w.shape[1])))
        return w.astype(jnp.bfloat16)

    b = jnp.zeros((SUBLANE, LANE), jnp.float32)
    b = b.at[0, :HIDDEN].set(params["b1"][0])
    b = b.at[1, :HIDDEN].set(params["b2"][0])
    b = b.at[2, :HIDDEN].set(params["b3"][0])
    b = b.at[3, :action_size].set(params["b4"][0])

    prepared = {
        "w1": pad_w(params["w1"], s_pad, LANE),
        "w2": pad_w(params["w2"], LANE, LANE),
        "w3": pad_w(params["w3"], LANE, LANE),
        "w4": pad_w(params["w4"], LANE, LANE),
        "b": b,
    }
    return prepared, state_size, action_size


def qnetwork_forward(x, prepared, action_size, *, tm=1024):
    """x: [B, state_size] f32. prepared: output of prepare_params."""
    B, S = x.shape
    s_pad = prepared["w1"].shape[0]

    # Batch tile: multiple of 8, capped at tm, and small enough that the grid
    # has >=2 steps when B is moderate (so both v7x TCs are used; harmless on
    # single-TC v5e/v6e).
    half = _round_up(max(pl.cdiv(max(B, 1), 2), 1), SUBLANE)
    b_tile = max(SUBLANE, min(tm, half))
    b_pad = _round_up(B, b_tile)

    # Only a tiny sublane/batch pad (no 128-lane pad, no wrapper bf16 cast);
    # for the common case (B, S already aligned) x is fed as-is.
    if b_pad != B or s_pad != S:
        x_in = jnp.pad(x, ((0, b_pad - B), (0, s_pad - S)))
    else:
        x_in = x

    grid = (b_pad // b_tile,)

    def resident(arr):
        # Constant block index -> DMA'd once, stays resident in VMEM.
        return pl.BlockSpec(arr.shape, lambda i: (0, 0))

    kernel = functools.partial(qnetwork_kernel, action_size)

    flops = 2 * b_pad * (s_pad * LANE + 3 * LANE * LANE)
    weight_bytes = sum(int(v.size) * v.dtype.itemsize for v in prepared.values())
    bytes_accessed = (int(x_in.size) * 4          # f32 input, logical width
                      + weight_bytes              # resident params (once)
                      + b_pad * action_size * 4)  # narrow f32 output

    out = pl.pallas_call(
        kernel,
        out_shape=jax.ShapeDtypeStruct((b_pad, action_size), jnp.float32),
        grid=grid,
        in_specs=[
            pl.BlockSpec((b_tile, s_pad), lambda i: (i, 0)),
            resident(prepared["w1"]),
            resident(prepared["w2"]),
            resident(prepared["w3"]),
            resident(prepared["w4"]),
            resident(prepared["b"]),
        ],
        out_specs=pl.BlockSpec((b_tile, action_size), lambda i: (i, 0)),
        compiler_params=pltpu.CompilerParams(
            dimension_semantics=("parallel",)),
        cost_estimate=pl.CostEstimate(
            flops=flops, transcendentals=0, bytes_accessed=bytes_accessed),
    )(x_in, prepared["w1"], prepared["w2"], prepared["w3"], prepared["w4"],
      prepared["b"])

    return out[:B] if b_pad != B else out


def qnetwork_ref_f32(x, params):
    h = jnp.maximum(x @ params["w1"] + params["b1"], 0.0)
    h = jnp.maximum(h @ params["w2"] + params["b2"], 0.0)
    h = jnp.maximum(h @ params["w3"] + params["b3"], 0.0)
    return h @ params["w4"] + params["b4"]


def qnetwork_ref_bf16(x, params):
    """Reference emulating the kernel's bf16-operand / f32-accumulate scheme."""
    bf = jnp.bfloat16
    h = x.astype(bf)
    for i in (1, 2, 3):
        h = jnp.dot(h, params[f"w{i}"].astype(bf),
                    preferred_element_type=jnp.float32) + params[f"b{i}"]
        h = jnp.maximum(h, 0.0).astype(bf)
    return jnp.dot(h, params["w4"].astype(bf),
                   preferred_element_type=jnp.float32) + params["b4"]


if __name__ == "__main__":
    key = jax.random.PRNGKey(0)
    k_params, k_x = jax.random.split(key)

    batch = 8
    state_size = 8      # e.g. CartPole-ish small state
    action_size = 4

    params = init_params(k_params, state_size, action_size)
    prepared, _, act = prepare_params(params)
    x = jax.random.normal(k_x, (batch, state_size), jnp.float32)

    out = qnetwork_forward(x, prepared, act)
    out = jax.block_until_ready(out)

    assert out.shape == (batch, action_size)

    # Tight check vs bf16-emulating reference (same numerics as the kernel).
    ref_bf16 = qnetwork_ref_bf16(x, params)
    assert jnp.allclose(out, ref_bf16, atol=1e-4, rtol=1e-4), \
        "mismatch vs bf16-operand JAX reference"

    # Loose sanity check vs full-f32 reference (bf16 operand rounding).
    ref_f32 = qnetwork_ref_f32(x, params)
    assert jnp.allclose(out, ref_f32, atol=5e-2, rtol=5e-2), \
        "mismatch vs f32 JAX reference"

    print("KERNEL_OK")
</pallas_src>

<mosaic_0001>
module attributes {stable_mosaic.version = 11 : i64} {
  func.func @qnetwork_kernel(%arg0: i32, %arg1: memref<8x8xf32, #tpu.memory_space<vmem>>, %arg2: memref<8x128xbf16, #tpu.memory_space<vmem>>, %arg3: memref<128x128xbf16, #tpu.memory_space<vmem>>, %arg4: memref<128x128xbf16, #tpu.memory_space<vmem>>, %arg5: memref<128x128xbf16, #tpu.memory_space<vmem>>, %arg6: memref<8x128xf32, #tpu.memory_space<vmem>>, %arg7: memref<8x4xf32, #tpu.memory_space<vmem>>) attributes {dimension_semantics = [#tpu.dimension_semantics<parallel>], iteration_bounds = array<i64: 1>, scalar_prefetch = 0 : i64, scratch_operands = 0 : i64, tpu.core_type = #tpu.core_type<tc>, window_params = [{transform_indices = @transform_0, window_bounds = array<i64: 8, 8>}, {pipeline_mode = #tpu.pipeline_mode<synchronous>, transform_indices = @transform_1, window_bounds = array<i64: 8, 128>}, {pipeline_mode = #tpu.pipeline_mode<synchronous>, transform_indices = @transform_2, window_bounds = array<i64: 128, 128>}, {pipeline_mode = #tpu.pipeline_mode<synchronous>, transform_indices = @transform_3, window_bounds = array<i64: 128, 128>}, {pipeline_mode = #tpu.pipeline_mode<synchronous>, transform_indices = @transform_4, window_bounds = array<i64: 128, 128>}, {pipeline_mode = #tpu.pipeline_mode<synchronous>, transform_indices = @transform_5, window_bounds = array<i64: 8, 128>}, {transform_indices = @transform_6, window_bounds = array<i64: 8, 4>}]} {
    %c0 = arith.constant 0 : index
    %c0_0 = arith.constant 0 : index
    %0 = vector.load %arg1[%c0, %c0_0] : memref<8x8xf32, #tpu.memory_space<vmem>>, vector<8x8xf32>
    %1 = arith.truncf %0 : vector<8x8xf32> to vector<8x8xbf16>
    %c0_1 = arith.constant 0 : index
    %c0_2 = arith.constant 0 : index
    %2 = vector.load %arg2[%c0_1, %c0_2] : memref<8x128xbf16, #tpu.memory_space<vmem>>, vector<8x128xbf16>
    %cst = arith.constant dense<0.000000e+00> : vector<8x128xf32>
    %3 = tpu.matmul %1, %2, %cst {dimension_numbers = #tpu.dot_dimension_numbers<[1], [0], [0], [1], [0, 0, 1, 1], [], []>} : vector<8x8xbf16>, vector<8x128xbf16>, vector<8x128xf32> -> vector<8x128xf32>
    %c0_3 = arith.constant 0 : index
    %c0_4 = arith.constant 0 : index
    %4 = vector.load %arg6[%c0_3, %c0_4] : memref<8x128xf32, #tpu.memory_space<vmem>>, vector<1x128xf32>
    %5 = vector.broadcast %4 : vector<1x128xf32> to vector<8x128xf32>
    %6 = arith.addf %3, %5 : vector<8x128xf32>
    %cst_5 = arith.constant 0.000000e+00 : f32
    %7 = vector.broadcast %cst_5 : f32 to vector<8x128xf32>
    %8 = arith.maximumf %6, %7 : vector<8x128xf32>
    %9 = arith.truncf %8 : vector<8x128xf32> to vector<8x128xbf16>
    %c0_6 = arith.constant 0 : index
    %c0_7 = arith.constant 0 : index
    %10 = vector.load %arg3[%c0_6, %c0_7] : memref<128x128xbf16, #tpu.memory_space<vmem>>, vector<128x128xbf16>
    %cst_8 = arith.constant dense<0.000000e+00> : vector<8x128xf32>
    %11 = tpu.matmul %9, %10, %cst_8 {dimension_numbers = #tpu.dot_dimension_numbers<[1], [0], [0], [1], [0, 0, 1, 1], [], []>} : vector<8x128xbf16>, vector<128x128xbf16>, vector<8x128xf32> -> vector<8x128xf32>
    %c1 = arith.constant 1 : index
    %c0_9 = arith.constant 0 : index
    %12 = vector.load %arg6[%c1, %c0_9] : memref<8x128xf32, #tpu.memory_space<vmem>>, vector<1x128xf32>
    %13 = vector.broadcast %12 : vector<1x128xf32> to vector<8x128xf32>
    %14 = arith.addf %11, %13 : vector<8x128xf32>
    %cst_10 = arith.constant 0.000000e+00 : f32
    %15 = vector.broadcast %cst_10 : f32 to vector<8x128xf32>
    %16 = arith.maximumf %14, %15 : vector<8x128xf32>
    %17 = arith.truncf %16 : vector<8x128xf32> to vector<8x128xbf16>
    %c0_11 = arith.constant 0 : index
    %c0_12 = arith.constant 0 : index
    %18 = vector.load %arg4[%c0_11, %c0_12] : memref<128x128xbf16, #tpu.memory_space<vmem>>, vector<128x128xbf16>
    %cst_13 = arith.constant dense<0.000000e+00> : vector<8x128xf32>
    %19 = tpu.matmul %17, %18, %cst_13 {dimension_numbers = #tpu.dot_dimension_numbers<[1], [0], [0], [1], [0, 0, 1, 1], [], []>} : vector<8x128xbf16>, vector<128x128xbf16>, vector<8x128xf32> -> vector<8x128xf32>
    %c2 = arith.constant 2 : index
    %c0_14 = arith.constant 0 : index
    %20 = vector.load %arg6[%c2, %c0_14] : memref<8x128xf32, #tpu.memory_space<vmem>>, vector<1x128xf32>
    %21 = vector.broadcast %20 : vector<1x128xf32> to vector<8x128xf32>
    %22 = arith.addf %19, %21 : vector<8x128xf32>
    %cst_15 = arith.constant 0.000000e+00 : f32
    %23 = vector.broadcast %cst_15 : f32 to vector<8x128xf32>
    %24 = arith.maximumf %22, %23 : vector<8x128xf32>
    %25 = arith.truncf %24 : vector<8x128xf32> to vector<8x128xbf16>
    %c0_16 = arith.constant 0 : index
    %c0_17 = arith.constant 0 : index
    %26 = vector.load %arg5[%c0_16, %c0_17] : memref<128x128xbf16, #tpu.memory_space<vmem>>, vector<128x128xbf16>
    %cst_18 = arith.constant dense<0.000000e+00> : vector<8x128xf32>
    %27 = tpu.matmul %25, %26, %cst_18 {dimension_numbers = #tpu.dot_dimension_numbers<[1], [0], [0], [1], [0, 0, 1, 1], [], []>} : vector<8x128xbf16>, vector<128x128xbf16>, vector<8x128xf32> -> vector<8x128xf32>
    %c3 = arith.constant 3 : index
    %c0_19 = arith.constant 0 : index
    %28 = vector.load %arg6[%c3, %c0_19] : memref<8x128xf32, #tpu.memory_space<vmem>>, vector<1x128xf32>
    %29 = vector.broadcast %28 : vector<1x128xf32> to vector<8x128xf32>
    %30 = arith.addf %27, %29 : vector<8x128xf32>
    %31 = vector.extract_strided_slice %30 {offsets = [0, 0], sizes = [8, 4], strides = [1, 1]} : vector<8x128xf32> to vector<8x4xf32>
    %c0_20 = arith.constant 0 : index
    %c0_21 = arith.constant 0 : index
    %32 = vector.load %arg7[%c0_20, %c0_21] : memref<8x4xf32, #tpu.memory_space<vmem>>, vector<8x4xf32>
    tpu.vector_store %arg7[%c0_20, %c0_21], %31 {strides = array<i32>} : memref<8x4xf32, #tpu.memory_space<vmem>>, vector<8x4xf32>,
    return
  }
  func.func @transform_0(%arg0: i32) -> (i32, i32) {
    %c0_i32 = arith.constant 0 : i32
    %c0_i32_0 = arith.constant 0 : i32
    return %arg0, %c0_i32 : i32, i32
  }
  func.func @transform_1(%arg0: i32) -> (i32, i32) {
    %c0_i32 = arith.constant 0 : i32
    %c0_i32_0 = arith.constant 0 : i32
    %c0_i32_1 = arith.constant 0 : i32
    return %c0_i32, %c0_i32_0 : i32, i32
  }
  func.func @transform_2(%arg0: i32) -> (i32, i32) {
    %c0_i32 = arith.constant 0 : i32
    %c0_i32_0 = arith.constant 0 : i32
    %c0_i32_1 = arith.constant 0 : i32
    return %c0_i32, %c0_i32_0 : i32, i32
  }
  func.func @transform_3(%arg0: i32) -> (i32, i32) {
    %c0_i32 = arith.constant 0 : i32
    %c0_i32_0 = arith.constant 0 : i32
    %c0_i32_1 = arith.constant 0 : i32
    return %c0_i32, %c0_i32_0 : i32, i32
  }
  func.func @transform_4(%arg0: i32) -> (i32, i32) {
    %c0_i32 = arith.constant 0 : i32
    %c0_i32_0 = arith.constant 0 : i32
    %c0_i32_1 = arith.constant 0 : i32
    return %c0_i32, %c0_i32_0 : i32, i32
  }
  func.func @transform_5(%arg0: i32) -> (i32, i32) {
    %c0_i32 = arith.constant 0 : i32
    %c0_i32_0 = arith.constant 0 : i32
    %c0_i32_1 = arith.constant 0 : i32
    return %c0_i32, %c0_i32_0 : i32, i32
  }
  func.func @transform_6(%arg0: i32) -> (i32, i32) {
    %c0_i32 = arith.constant 0 : i32
    %c0_i32_0 = arith.constant 0 : i32
    return %arg0, %c0_i32 : i32, i32
  }
}

</mosaic_0001>

<bundles_post_ra>
// kernel: tpu_custom_call.1
= control target key start
LH: loop header
LB: loop body
LE: loop exit
PB: predicated region body
PF: predicated region fallthrough
CT: control target
= control target key end

     0   :  { %11 = vsyncpa [#allocation3], 0  ;;  %s920_s0 = inlined_call_operand.hbm [shape: f32[8,8], index: 0, kind: input, shape index: {}]   ;;  %s921_s1 = inlined_call_operand.hbm [shape: bf16[8,128], index: 1, kind: input, shape index: {}]   ;;  %s922_s2 = inlined_call_operand.hbm [shape: bf16[128,128], index: 2, kind: input, shape index: {}]   ;;  %s923_s3 = inlined_call_operand.hbm [shape: bf16[128,128], index: 3, kind: input, shape index: {}]   ;;  %s924_s4 = inlined_call_operand.hbm [shape: bf16[128,128], index: 4, kind: input, shape index: {}]   ;;  %s925_s5 = inlined_call_operand.vmem [shape: f32[8,128], index: 5, kind: input, shape index: {}]   ;;  %s926_s6 = inlined_call_operand.vmem [shape: f32[8,4], index: 6, kind: output, shape index: {}]  }
   0x1   :  { %12 = vsyncpa [#allocation5], 0 }
   0x2   :  { %13 = vsyncpa [#allocation8], 0  ;;  %s759_s21 = smov [#allocation4]   ;;  %s643_s25 = scalar_lea.hbm %s921_s1, 64 }
   0x3   :  { %s30_s22 = sshll.u32 %s759_s21, 4  ;;  %p644_p0 = scmp.ne.s32.totalorder %s921_s1, %s643_s25  ;;  %s31_s22 = int_to_ptr.vmem [resolvable:$true] %s30_s22 }
   0x4   :  { %p647_p1 = scmp.lt.u32.totalorder %s643_s25, %s921_s1 }
   0x6   :  { %p649_p2 = pnand %p647_p1, %p644_p0 }
   0x8   :  { %652 = shalt.err (!%p649_p2)
}
   0x9   :  { %s653_s30 = scalar_lea.vmem %s31_s22, 64  ;;  %p658_p4 = scmp.lt.s32.totalorder %s31_s22, %s31_s22 }
   0xa   :  { %p654_p3 = scmp.ne.s32.totalorder %s31_s22, %s653_s30  ;;  %p659_p5 = scmp.lt.s32.totalorder %s653_s30, %s653_s30 }
   0xc   :  { %p660_p6 = por %p659_p5, %p658_p4 }
   0xe   :  { %p661_p7 = pnand %p660_p6, %p654_p3 }
  0x10   :  { %664 = shalt.err (!%p661_p7)
}
  0x11   :  { %33 = dma.hbm_to_vmem [thread:$0]  %s921_s1, 64, %s31_s22, [#allocation5]  }
  0x12   :  { %s760_s9 = smov [#allocation7]   ;;  %s761_s11 = smov [#allocation2]  }
  0x13   :  { %s51_s10 = sshll.u32 %s760_s9, 4  ;;  %s20_s12 = sshll.u32 %s761_s11, 4  ;;  %s52_s10 = int_to_ptr.vmem [resolvable:$true] %s51_s10  ;;  %s21_s12 = int_to_ptr.vmem [resolvable:$true] %s20_s12 }
  0x14   :  { %s665_s15 = scalar_lea.hbm %s923_s3, 1024 }
  0x15   :  { %p666_p8 = scmp.ne.s32.totalorder %s923_s3, %s665_s15  ;;  %p669_p9 = scmp.lt.u32.totalorder %s665_s15, %s923_s3 }
  0x17   :  { %p671_p10 = pnand %p669_p9, %p666_p8 }
  0x19   :  { %674 = shalt.err (!%p671_p10)
}
  0x1a   :  { %s675_s1 = scalar_lea.vmem %s52_s10, 1024  ;;  %p680_p12 = scmp.lt.s32.totalorder %s52_s10, %s52_s10 }
  0x1b   :  { %p676_p11 = scmp.ne.s32.totalorder %s52_s10, %s675_s1  ;;  %p681_p13 = scmp.lt.s32.totalorder %s675_s1, %s675_s1 }
  0x1d   :  { %p682_p0 = por %p681_p13, %p680_p12 }
  0x1f   :  { %p683_p1 = pnand %p682_p0, %p676_p11 }
  0x21   :  { %686 = shalt.err (!%p683_p1)
}
  0x22   :  { %s762_s20 = smov 64   ;;  %s763_s21 = smov 4  }
  0x23   :  { %57 = dma.hbm_to_vmem [thread:$0]  %s923_s3, 1024, %s52_s10, [#allocation8], %s762_s20, %s762_s20, %s763_s21  }
  0x24   :  { %s687_s26 = scalar_lea.hbm %s920_s0, 128 }
  0x25   :  { %p688_p2 = scmp.ne.s32.totalorder %s920_s0, %s687_s26  ;;  %p691_p3 = scmp.lt.u32.totalorder %s687_s26, %s920_s0 }
  0x27   :  { %p693_p4 = pnand %p691_p3, %p688_p2 }
  0x29   :  { %696 = shalt.err (!%p693_p4)
}
  0x2a   :  { %s697_s7 = scalar_lea.vmem %s21_s12, 128  ;;  %p702_p6 = scmp.lt.s32.totalorder %s21_s12, %s21_s12 }
  0x2b   :  { %p698_p5 = scmp.ne.s32.totalorder %s21_s12, %s697_s7  ;;  %p703_p7 = scmp.lt.s32.totalorder %s697_s7, %s697_s7 }
  0x2d   :  { %p704_p8 = por %p703_p7, %p702_p6 }
  0x2f   :  { %p705_p9 = pnand %p704_p8, %p698_p5 }
  0x31   :  { %708 = shalt.err (!%p705_p9)
}
  0x32   :  { %23 = dma.hbm_to_vmem [thread:$0]  %s920_s0, 128, %s21_s12, [#allocation3]  }
  0x33   :  { %s764_s9 = smov [#allocation6]   ;;  %s765_s11 = smov [#allocation9]  }
  0x34   :  { %s39_s10 = sshll.u32 %s764_s9, 4  ;;  %s63_s13 = sshll.u32 %s765_s11, 4  ;;  %s40_s10 = int_to_ptr.vmem [resolvable:$true] %s39_s10  ;;  %s64_s13 = int_to_ptr.vmem [resolvable:$true] %s63_s13 }
  0x35   :  { %s709_s16 = scalar_lea.hbm %s922_s2, 1024 }
  0x36   :  { %p710_p10 = scmp.ne.s32.totalorder %s922_s2, %s709_s16  ;;  %p713_p11 = scmp.lt.u32.totalorder %s709_s16, %s922_s2 }
  0x38   :  { %p715_p12 = pnand %p713_p11, %p710_p10 }
  0x3a   :  { %718 = shalt.err (!%p715_p12)
}
  0x3b   :  { %s719_s0 = scalar_lea.vmem %s40_s10, 1024  ;;  %p724_p0 = scmp.lt.s32.totalorder %s40_s10, %s40_s10 }
  0x3c   :  { %p720_p13 = scmp.ne.s32.totalorder %s40_s10, %s719_s0  ;;  %p725_p1 = scmp.lt.s32.totalorder %s719_s0, %s719_s0 }
  0x3e   :  { %p726_p2 = por %p725_p1, %p724_p0 }
  0x40   :  { %p727_p3 = pnand %p726_p2, %p720_p13 }
  0x42   :  { %730 = shalt.err (!%p727_p3)
}
  0x43   :  { %45 = dma.hbm_to_vmem [thread:$0]  %s922_s2, 1024, %s40_s10, [#allocation5], %s762_s20, %s762_s20, %s763_s21  }
  0x44   :  { %s731_s25 = scalar_lea.hbm %s924_s4, 1024 }
  0x45   :  { %p732_p4 = scmp.ne.s32.totalorder %s924_s4, %s731_s25  ;;  %p735_p5 = scmp.lt.u32.totalorder %s731_s25, %s924_s4 }
  0x47   :  { %p737_p6 = pnand %p735_p5, %p732_p4 }
  0x49   :  { %740 = shalt.err (!%p737_p6)
}
  0x4a   :  { %s741_s30 = scalar_lea.vmem %s64_s13, 1024  ;;  %p746_p8 = scmp.lt.s32.totalorder %s64_s13, %s64_s13 }
  0x4b   :  { %p742_p7 = scmp.ne.s32.totalorder %s64_s13, %s741_s30  ;;  %p747_p9 = scmp.lt.s32.totalorder %s741_s30, %s741_s30 }
  0x4d   :  { %p748_p10 = por %p747_p9, %p746_p8 }
  0x4f   :  { %p749_p11 = pnand %p748_p10, %p742_p7 }
  0x51   :  { %752 = shalt.err (!%p749_p11)
}
  0x52   :  { %69 = dma.hbm_to_vmem [thread:$0]  %s924_s4, 1024, %s64_s13, [#allocation8], %s762_s20, %s762_s20, %s763_s21  }
  0x53   :  { %753 = dma.done.wait [#allocation3], 128  }
  0x54   :  { %754 = vsyncadd [#allocation3], 4294967168 }
  0x55   :  { %755 = dma.done.wait [#allocation5], 1088  }
  0x56   :  { %756 = vsyncadd [#allocation5], 4294966208 }
  0x57   :  { %757 = dma.done.wait [#allocation8], 2048  }
  0x58   :  { %758 = vsyncadd [#allocation8], 4294965248  ;;  %v766_v0 = vmov 0.0   ;;  %vm767_vm0 = vmmov 0   ;;  %vm100_vm1 = vcmask 1043456   ;;  %v88_v2 = vld [vmem:[#allocation2] sm:$0xff] }
  0x59   :  { %544 = vmatprep.subr.bf16.mxu0 %v766_v0  ;;  %546 = vmatprep.mubr.msk.bf16.mxu0 %vm767_vm0, %v766_v0  ;;  %v90_v1 = vld [vmem:[#allocation4] sm:$0xf]  ;;  %v89_v4 = vpack.c.bf16 %v88_v2, %v88_v2  ;;  %v619_v5 = vld [vmem:[#allocation6] sm:$0xff]   ;;  %vm96_vm2 = vcmask 64512   ;;  %v620_v6 = vld [vmem:[#allocation6 + $0x8] sm:$0xff]   ;;  %vm477_vm3 = vcmask 31744  }
  0x5a   :  { %550 = vmatprep.subr.bf16.mxu1 %v766_v0  ;;  %566 = vmatprep.mubr.msk.bf16.mxu1 %vm767_vm0, %v766_v0  ;;  %v102_v3 = vsel %vm100_vm1, %v90_v1, 0  ;;  %v621_v7 = vld [vmem:[#allocation6 + $0x10] sm:$0xff]   ;;  %v622_v8 = vld [vmem:[#allocation6 + $0x18] sm:$0xff]   ;;  %v623_v9 = vld [vmem:[#allocation6 + $0x20] sm:$0xff]  }
  0x5b   :  { %545 = vmatpush3.bf16.msra.mxu0 %v102_v3  ;;  %551 = vmatpush3.bf16.msra.mxu1 %v619_v5  ;;  %v624_v10 = vld [vmem:[#allocation6 + $0x28] sm:$0xff]   ;;  %v625_v11 = vld [vmem:[#allocation6 + $0x30] sm:$0xff]   ;;  %v626_v12 = vld [vmem:[#allocation6 + $0x38] sm:$0xff]  }
  0x5c   :  { %570 = vmatprep.subr.bf16.mxu0 %v766_v0  ;;  %552 = vmatprep.subr.bf16.mxu1 %v766_v0  ;;  %v627_v13 = vld [vmem:[#allocation7] sm:$0xff]   ;;  %v628_v14 = vld [vmem:[#allocation7 + $0x8] sm:$0xff]   ;;  %v629_v15 = vld [vmem:[#allocation7 + $0x10] sm:$0xff]  }
  0x5d   :  { %v630_v16 = vld [vmem:[#allocation7 + $0x18] sm:$0xff]   ;;  %v631_v17 = vld [vmem:[#allocation7 + $0x20] sm:$0xff]   ;;  %v632_v18 = vld [vmem:[#allocation7 + $0x28] sm:$0xff]  }
  0x5e   :  { %547 = vmatmul.mubr.msk.bf16.vlgmr.msra.gmra.mrb[0].mxu0 %vm96_vm2, %v89_v4  ;;  %v486_v19 = vld [vmem:[%s925_s5] ss:$0 sm:$0xff]  ;;  %v634_v28 = vld [vmem:[#allocation7 + $0x38] sm:$0xff]   ;;  %v635_v29 = vld [vmem:[#allocation9] sm:$0xff]  }
  0x5f   :  { %586 = vmatprep.mubr.msk.bf16.mxu0 %vm767_vm0, %v766_v0  ;;  %553 = vmatpush3.bf16.msra.mxu1 %v620_v6  ;;  %v633_v27 = vld [vmem:[#allocation7 + $0x30] sm:$0xff]   ;;  %v636_v30 = vld [vmem:[#allocation9 + $0x8] sm:$0xff]   ;;  %v638_v32 = vld [vmem:[#allocation9 + $0x18] sm:$0xff]  }
  0x60   :  { %554 = vmatprep.subr.bf16.mxu1 %v766_v0  ;;  %571 = vmatpush3.bf16.msra.mxu0 %v627_v13  ;;  %v637_v31 = vld [vmem:[#allocation9 + $0x10] sm:$0xff]   ;;  %v639_v33 = vld [vmem:[#allocation9 + $0x20] sm:$0xff]   ;;  %v640_v34 = vld [vmem:[#allocation9 + $0x28] sm:$0xff]  }
  0x61   :  { %572 = vmatprep.subr.bf16.mxu0 %v766_v0  ;;  %v488_v35 = vld [vmem:[%s925_s5 + $0x1] ss:$0 sm:$0xff]  ;;  %v642_v44 = vld [vmem:[#allocation9 + $0x38] sm:$0xff]   ;;  %v497_v45 = vld [vmem:[%s925_s5 + $0x2] ss:$0 sm:$0xff] }
  0x62   :  { %v641_v43 = vld [vmem:[#allocation9 + $0x30] sm:$0xff]  }
  0x63   :  { %555 = vmatpush3.bf16.msra.mxu1 %v621_v7  ;;  %v506_v53 = vld [vmem:[%s925_s5 + $0x3] ss:$0 sm:$0xff] }
  0x64   :  { %556 = vmatprep.subr.bf16.mxu1 %v766_v0  ;;  %573 = vmatpush3.bf16.msra.mxu0 %v628_v14 }
  0x65   :  { %574 = vmatprep.subr.bf16.mxu0 %v766_v0 }
  0x67   :  { %557 = vmatpush3.bf16.msra.mxu1 %v622_v8 }
  0x68   :  { %558 = vmatprep.subr.bf16.mxu1 %v766_v0  ;;  %575 = vmatpush3.bf16.msra.mxu0 %v629_v15 }
  0x69   :  { %576 = vmatprep.subr.bf16.mxu0 %v766_v0 }
  0x6b   :  { %559 = vmatpush3.bf16.msra.mxu1 %v623_v9 }
  0x6c   :  { %560 = vmatprep.subr.bf16.mxu1 %v766_v0  ;;  %577 = vmatpush3.bf16.msra.mxu0 %v630_v16 }
  0x6d   :  { %578 = vmatprep.subr.bf16.mxu0 %v766_v0 }
  0x6f   :  { %561 = vmatpush3.bf16.msra.mxu1 %v624_v10 }
  0x70   :  { %562 = vmatprep.subr.bf16.mxu1 %v766_v0  ;;  %579 = vmatpush3.bf16.msra.mxu0 %v631_v17 }
  0x71   :  { %580 = vmatprep.subr.bf16.mxu0 %v766_v0 }
  0x73   :  { %563 = vmatpush3.bf16.msra.mxu1 %v625_v11 }
  0x74   :  { %564 = vmatprep.subr.bf16.mxu1 %v766_v0  ;;  %581 = vmatpush3.bf16.msra.mxu0 %v632_v18 }
  0x75   :  { %582 = vmatprep.subr.bf16.mxu0 %v766_v0 }
  0x77   :  { %565 = vmatpush3.bf16.msra.mxu1 %v626_v12 }
  0x78   :  { %590 = vmatprep.subr.bf16.mxu1 %v766_v0  ;;  %583 = vmatpush3.bf16.msra.mxu0 %v633_v27 }
  0x79   :  { %584 = vmatprep.subr.bf16.mxu0 %v766_v0 }
  0x7c   :  { %585 = vmatpush3.bf16.msra.mxu0 %v634_v28 }
 0x131   :  { %v138_v20 = vpop.f32.mrb[0].mxu0 }
 0x132   :  { %v139_v21 = vadd.f32 %v486_v19, %v138_v20  ;;  %v548_v22 = vpop.f32.mrb[1].mxu0 }
 0x133   :  { %v141_v23 = vpop.f32.mrb[2].mxu0 }
 0x134   :  { %v144_v24 = vmax.f32 %v139_v21, 0.0  ;;  %v549_v25 = vpop.f32.mrb[3].mxu0 }
 0x136   :  { %v145_v26 = vpack.c.bf16 %v144_v24, %v144_v24 }
 0x138   :  { %567 = vmatmul.mubr.bf16.vlgmr.msra.gmra.mrb[0].mxu1 %v145_v26 }
 0x139   :  { %606 = vmatprep.mubr.msk.bf16.mxu1 %vm767_vm0, %v766_v0  ;;  %591 = vmatpush3.bf16.msra.mxu1 %v635_v29 }
 0x13a   :  { %592 = vmatprep.subr.bf16.mxu1 %v766_v0 }
 0x13d   :  { %593 = vmatpush3.bf16.msra.mxu1 %v636_v30 }
 0x13e   :  { %594 = vmatprep.subr.bf16.mxu1 %v766_v0 }
 0x141   :  { %595 = vmatpush3.bf16.msra.mxu1 %v637_v31 }
 0x142   :  { %596 = vmatprep.subr.bf16.mxu1 %v766_v0 }
 0x145   :  { %597 = vmatpush3.bf16.msra.mxu1 %v638_v32 }
 0x146   :  { %598 = vmatprep.subr.bf16.mxu1 %v766_v0 }
 0x149   :  { %599 = vmatpush3.bf16.msra.mxu1 %v639_v33 }
 0x14a   :  { %600 = vmatprep.subr.bf16.mxu1 %v766_v0 }
 0x14d   :  { %601 = vmatpush3.bf16.msra.mxu1 %v640_v34 }
 0x14e   :  { %602 = vmatprep.subr.bf16.mxu1 %v766_v0 }
 0x151   :  { %603 = vmatpush3.bf16.msra.mxu1 %v641_v43 }
 0x152   :  { %604 = vmatprep.subr.bf16.mxu1 %v766_v0 }
 0x155   :  { %605 = vmatpush3.bf16.msra.mxu1 %v642_v44 }
 0x20b   :  { %v249_v36 = vpop.f32.mrb[0].mxu1 }
 0x20c   :  { %v250_v37 = vadd.f32 %v488_v35, %v249_v36  ;;  %v568_v38 = vpop.f32.mrb[1].mxu1 }
 0x20d   :  { %v252_v39 = vpop.f32.mrb[2].mxu1 }
 0x20e   :  { %v255_v40 = vmax.f32 %v250_v37, 0.0  ;;  %v569_v41 = vpop.f32.mrb[3].mxu1 }
 0x210   :  { %v256_v42 = vpack.c.bf16 %v255_v40, %v255_v40 }
 0x212   :  { %587 = vmatmul.mubr.bf16.vlgmr.msra.gmra.mrb[4].mxu0 %v256_v42 }
 0x2e5   :  { %v360_v46 = vpop.f32.mrb[4].mxu0 }
 0x2e6   :  { %v361_v47 = vadd.f32 %v497_v45, %v360_v46  ;;  %v588_v48 = vpop.f32.mrb[5].mxu0 }
 0x2e7   :  { %v363_v49 = vpop.f32.mrb[6].mxu0 }
 0x2e8   :  { %v366_v50 = vmax.f32 %v361_v47, 0.0  ;;  %v589_v51 = vpop.f32.mrb[7].mxu0 }
 0x2ea   :  { %v367_v52 = vpack.c.bf16 %v366_v50, %v366_v50 }
 0x2ec   :  { %607 = vmatmul.mubr.bf16.vlgmr.msra.gmra.mrb[4].mxu1 %v367_v52 }
 0x3bf   :  { %v471_v54 = vpop.f32.mrb[4].mxu1 }
 0x3c0   :  { %v472_v55 = vadd.f32 %v506_v53, %v471_v54  ;;  %v608_v56 = vpop.f32.mrb[5].mxu1 }
 0x3c1   :  { %v474_v57 = vpop.f32.mrb[6].mxu1 }
 0x3c2   :  { %478 = vst.msk [vmem:[%s926_s6] sm:$0xff] %vm477_vm3, %v472_v55  ;;  %v609_v58 = vpop.f32.mrb[7].mxu1 }
 0x3c3   :  { %483 = vsyncpa [#allocation3], 1 }
 0x3c4   :  { %484 = vsyncpa [#allocation5], 1 }
 0x3c5   :  { %485 = vsyncpa [#allocation8], 1 }

</bundles_post_ra>
